<compile_context>
chip_gen: v7x
topology: tpu7x:2x2x1
jax: 0.10.0
libtpu: 0.0.40
codegen_flags: <defaults>
</compile_context>

<pallas_src>
import jax
import jax.numpy as jnp
from jax import lax
from jax.experimental import pallas as pl
from jax.experimental.pallas import tpu as pltpu

KH = KW = 3
BN_EPS = 1e-5


# ------------- kernel 1: conv + per-(w,c)-column sum / sumsq accumulation ---- #
def conv_stats_kernel(x_ref, w_ref, sum_ref, sumsq_ref):
    # x_ref:   (H+2, (W+2)*Cin)      one spatially padded image (lanes = W,Cin)
    # w_ref:   (KH, (W+2)*Cin, W*Cout) banded conv weights (VMEM resident)
    # sum_ref, sumsq_ref: (1, W*Cout) accumulators, resident across the grid
    H = x_ref.shape[0] - (KH - 1)
    xi = x_ref[...]

    y = jnp.dot(xi[0:H, :], w_ref[0], preferred_element_type=jnp.float32)
    for ky in range(1, KH):
        y += jnp.dot(xi[ky:ky + H, :], w_ref[ky],
                     preferred_element_type=jnp.float32)

    # TODO(synk): for large H*(W*Cout) tiles, fold this into a fori_loop over
    # vreg-sized row chunks so y*y never materializes as a full-tile temporary.
    ps = jnp.sum(y, axis=0, keepdims=True)
    pss = jnp.sum(y * y, axis=0, keepdims=True)

    @pl.when(pl.program_id(0) == 0)
    def _():
        sum_ref[...] = jnp.zeros_like(sum_ref)
        sumsq_ref[...] = jnp.zeros_like(sumsq_ref)

    sum_ref[...] += ps
    sumsq_ref[...] += pss


# ------------- kernel 2: conv (recomputed) + affine BN + ReLU ---------------- #
def conv_norm_relu_kernel(x_ref, w_ref, scale_ref, shift_ref, o_ref):
    # scale_ref/shift_ref: (1, W*Cout) per-column BN affine (channel values
    # replicated across the folded W positions).  o_ref: (H, W*Cout).
    H = x_ref.shape[0] - (KH - 1)
    xi = x_ref[...]

    y = jnp.dot(xi[0:H, :], w_ref[0], preferred_element_type=jnp.float32)
    for ky in range(1, KH):
        y += jnp.dot(xi[ky:ky + H, :], w_ref[ky],
                     preferred_element_type=jnp.float32)

    out = jnp.maximum(y * scale_ref[...] + shift_ref[...], 0.0)
    o_ref[...] = out.astype(o_ref.dtype)


# --------------------------------- wrapper ----------------------------------- #
def _band_weights(w_hwio, W):
    # (KH, KW, Cin, Cout) -> (KH, (W+KW-1)*Cin, W*Cout) block-Toeplitz weights:
    #   B[ky][(w+kx)*Cin + ci, w*Cout + c] = w_hwio[ky, kx, ci, c]
    KH_, KW_, Cin, Cout = w_hwio.shape
    rows = (W + KW_ - 1) * Cin
    bands = []
    for ky in range(KH_):
        wk = w_hwio[ky].reshape(KW_ * Cin, Cout)
        base = jnp.pad(wk, ((0, rows - KW_ * Cin), (0, 0)))
        slab = jnp.stack([jnp.roll(base, w * Cin, axis=0) for w in range(W)],
                         axis=1)                                # (rows, W, Cout)
        bands.append(slab.reshape(rows, W * Cout))
    return jnp.stack(bands, axis=0)


def _cparams(sem):
    # Tiny per-step working set (one padded image + banded weights); limit kept
    # well under the v7x 64 MiB physical VMEM with double-buffer headroom.
    return pltpu.CompilerParams(dimension_semantics=(sem,),
                                vmem_limit_bytes=32 * 1024 * 1024)


def conv_bn_relu(x_nhwc, w_hwio, bias, gamma, beta):
    N, H, W, Cin = x_nhwc.shape
    Cout = w_hwio.shape[-1]
    WCp = W * Cout                    # folded lane dim (lane-dense, no zero pad)
    WCin = (W + KW - 1) * Cin         # padded-width * Cin lane dim of the input

    # Conv bias cancels exactly under training-mode BN (mean subtraction), so it
    # is intentionally not fed to the kernels (verified against the reference).
    del bias

    # Spatial zero pad; flatten (W+2, Cin) into the lane dim (~1x HBM traffic).
    x_pad = jnp.pad(x_nhwc, ((0, 0), (1, 1), (1, 1), (0, 0)))
    x_flat = x_pad.reshape(N, H + KH - 1, WCin)

    w_band = _band_weights(w_hwio, W)                           # (KH, WCin, WCp)

    x_spec = pl.BlockSpec((None, H + KH - 1, WCin), lambda n: (n, 0, 0))
    w_spec = pl.BlockSpec((KH, WCin, WCp), lambda n: (0, 0, 0))   # VMEM resident
    col_spec = pl.BlockSpec((1, WCp), lambda n: (0, 0))

    mm_flops = 2 * N * H * WCin * WCp * KH
    x_bytes = x_flat.size * 4
    w_bytes = w_band.size * 4
    o_bytes = N * H * WCp * 4

    # ---- pass 1: per-(w,c)-column sum / sumsq over the whole batch ---------- #
    col_sum, col_sumsq = pl.pallas_call(
        conv_stats_kernel,
        out_shape=(jax.ShapeDtypeStruct((1, WCp), jnp.float32),
                   jax.ShapeDtypeStruct((1, WCp), jnp.float32)),
        grid=(N,),
        in_specs=[x_spec, w_spec],
        out_specs=(col_spec, col_spec),
        compiler_params=_cparams("arbitrary"),      # grid carries a reduction
        cost_estimate=pl.CostEstimate(flops=mm_flops, transcendentals=0,
                                      bytes_accessed=x_bytes + w_bytes),
    )(x_flat, w_band)

    # ---- tiny O(Cout) epilogue: fold columns -> per-channel scale / shift ---- #
    cnt = float(N * H * W)
    ch_sum = col_sum.reshape(W, Cout).sum(axis=0)
    ch_sumsq = col_sumsq.reshape(W, Cout).sum(axis=0)
    mean = ch_sum / cnt
    var = jnp.maximum(ch_sumsq / cnt - mean * mean, 0.0)
    # TODO(synk): switch to a shifted / Welford per-tile accumulation for very
    # large N*H*W where E[y^2]-E[y]^2 cancellation could approach BN_EPS.
    scale_c = gamma * lax.rsqrt(var + BN_EPS)
    shift_c = beta - mean * scale_c
    scale_col = jnp.tile(scale_c, W).reshape(1, WCp)
    shift_col = jnp.tile(shift_c, W).reshape(1, WCp)

    # ---- pass 2: recompute conv, apply affine BN + ReLU, lane-dense store ---- #
    out = pl.pallas_call(
        conv_norm_relu_kernel,
        out_shape=jax.ShapeDtypeStruct((N, H, WCp), jnp.float32),
        grid=(N,),
        in_specs=[x_spec, w_spec, col_spec, col_spec],
        out_specs=pl.BlockSpec((None, H, WCp), lambda n: (n, 0, 0)),
        compiler_params=_cparams("parallel"),       # independent images (v7x megacore)
        cost_estimate=pl.CostEstimate(flops=mm_flops, transcendentals=0,
                                      bytes_accessed=x_bytes + w_bytes + o_bytes),
    )(x_flat, w_band, scale_col, shift_col)

    # Free contiguous reshape back to NHWC.
    return out.reshape(N, H, W, Cout)


# -------------------------------- reference ---------------------------------- #
def conv_bn_relu_ref(x_nhwc, w_hwio, b, gamma, beta):
    # Faithful PyTorch-style reference (conv bias INCLUDED) to verify that
    # dropping it in the kernels is exactly equivalent under training-mode BN.
    y = lax.conv_general_dilated(
        x_nhwc, w_hwio, window_strides=(1, 1), padding=((1, 1), (1, 1)),
        dimension_numbers=("NHWC", "HWIO", "NHWC"))
    y = y + b.reshape(1, 1, 1, -1)
    mean = jnp.mean(y, axis=(0, 1, 2), keepdims=True)
    var = jnp.mean((y - mean) ** 2, axis=(0, 1, 2), keepdims=True)
    y = (y - mean) * lax.rsqrt(var + BN_EPS)
    y = y * gamma.reshape(1, 1, 1, -1) + beta.reshape(1, 1, 1, -1)
    return jnp.maximum(y, 0.0)


if __name__ == "__main__":
    N, Cin, H, W = 2, 4, 16, 16
    Cout = 8

    key = jax.random.PRNGKey(0)
    kx, kw, kb, kg, kbt = jax.random.split(key, 5)

    # PyTorch-convention tensors (NCHW input, OIHW weight), deterministic init.
    x_nchw = jax.random.normal(kx, (N, Cin, H, W), jnp.float32)
    w_oihw = jax.random.normal(kw, (Cout, Cin, KH, KW), jnp.float32) * 0.1
    bias = jax.random.normal(kb, (Cout,), jnp.float32) * 0.1
    gamma = 1.0 + 0.1 * jax.random.normal(kg, (Cout,), jnp.float32)
    beta = 0.1 * jax.random.normal(kbt, (Cout,), jnp.float32)

    # glue: NCHW -> NHWC, OIHW -> HWIO
    x_nhwc = jnp.transpose(x_nchw, (0, 2, 3, 1))
    w_hwio = jnp.transpose(w_oihw, (2, 3, 1, 0))

    out = jax.block_until_ready(conv_bn_relu(x_nhwc, w_hwio, bias, gamma, beta))
    ref = conv_bn_relu_ref(x_nhwc, w_hwio, bias, gamma, beta)

    assert out.shape == (N, H, W, Cout)
    assert jnp.allclose(out, ref, atol=1e-4, rtol=1e-4), "mismatch vs reference"

    print("KERNEL_OK")
</pallas_src>

<mosaic_0001>
module attributes {stable_mosaic.version = 11 : i64} {
  func.func @conv_stats_kernel(%arg0: i32, %arg1: memref<1x18x72xf32, #tpu.memory_space<vmem>>, %arg2: memref<3x72x128xf32, #tpu.memory_space<vmem>>, %arg3: memref<1x128xf32, #tpu.memory_space<vmem>>, %arg4: memref<1x128xf32, #tpu.memory_space<vmem>>) attributes {dimension_semantics = [#tpu.dimension_semantics<arbitrary>], iteration_bounds = array<i64: 2>, scalar_prefetch = 0 : i64, scratch_operands = 0 : i64, tpu.core_type = #tpu.core_type<tc>, window_params = [{transform_indices = @transform_0, window_bounds = array<i64: 1, 18, 72>}, {pipeline_mode = #tpu.pipeline_mode<synchronous>, transform_indices = @transform_1, window_bounds = array<i64: 3, 72, 128>}, {pipeline_mode = #tpu.pipeline_mode<synchronous>, transform_indices = @transform_2, window_bounds = array<i64: 1, 128>}, {pipeline_mode = #tpu.pipeline_mode<synchronous>, transform_indices = @transform_3, window_bounds = array<i64: 1, 128>}]} {
    %c0 = arith.constant 0 : index
    %c0_0 = arith.constant 0 : index
    %c0_1 = arith.constant 0 : index
    %0 = vector.load %arg1[%c0, %c0_0, %c0_1] : memref<1x18x72xf32, #tpu.memory_space<vmem>>, vector<1x18x72xf32>
    %1 = vector.shape_cast %0 : vector<1x18x72xf32> to vector<18x72xf32>
    %2 = vector.extract_strided_slice %1 {offsets = [0, 0], sizes = [16, 72], strides = [1, 1]} : vector<18x72xf32> to vector<16x72xf32>
    %c0_2 = arith.constant 0 : index
    %c0_3 = arith.constant 0 : index
    %c0_4 = arith.constant 0 : index
    %3 = vector.load %arg2[%c0_2, %c0_3, %c0_4] : memref<3x72x128xf32, #tpu.memory_space<vmem>>, vector<1x72x128xf32>
    %4 = vector.shape_cast %3 : vector<1x72x128xf32> to vector<72x128xf32>
    %cst = arith.constant dense<0.000000e+00> : vector<16x128xf32>
    %5 = tpu.matmul %2, %4, %cst {dimension_numbers = #tpu.dot_dimension_numbers<[1], [0], [0], [1], [0, 0, 1, 1], [], []>} : vector<16x72xf32>, vector<72x128xf32>, vector<16x128xf32> -> vector<16x128xf32>
    %6 = vector.extract_strided_slice %1 {offsets = [1, 0], sizes = [16, 72], strides = [1, 1]} : vector<18x72xf32> to vector<16x72xf32>
    %c1 = arith.constant 1 : index
    %c0_5 = arith.constant 0 : index
    %c0_6 = arith.constant 0 : index
    %7 = vector.load %arg2[%c1, %c0_5, %c0_6] : memref<3x72x128xf32, #tpu.memory_space<vmem>>, vector<1x72x128xf32>
    %8 = vector.shape_cast %7 : vector<1x72x128xf32> to vector<72x128xf32>
    %cst_7 = arith.constant dense<0.000000e+00> : vector<16x128xf32>
    %9 = tpu.matmul %6, %8, %cst_7 {dimension_numbers = #tpu.dot_dimension_numbers<[1], [0], [0], [1], [0, 0, 1, 1], [], []>} : vector<16x72xf32>, vector<72x128xf32>, vector<16x128xf32> -> vector<16x128xf32>
    %10 = arith.addf %5, %9 : vector<16x128xf32>
    %11 = vector.extract_strided_slice %1 {offsets = [2, 0], sizes = [16, 72], strides = [1, 1]} : vector<18x72xf32> to vector<16x72xf32>
    %c2 = arith.constant 2 : index
    %c0_8 = arith.constant 0 : index
    %c0_9 = arith.constant 0 : index
    %12 = vector.load %arg2[%c2, %c0_8, %c0_9] : memref<3x72x128xf32, #tpu.memory_space<vmem>>, vector<1x72x128xf32>
    %13 = vector.shape_cast %12 : vector<1x72x128xf32> to vector<72x128xf32>
    %cst_10 = arith.constant dense<0.000000e+00> : vector<16x128xf32>
    %14 = tpu.matmul %11, %13, %cst_10 {dimension_numbers = #tpu.dot_dimension_numbers<[1], [0], [0], [1], [0, 0, 1, 1], [], []>} : vector<16x72xf32>, vector<72x128xf32>, vector<16x128xf32> -> vector<16x128xf32>
    %15 = arith.addf %10, %14 : vector<16x128xf32>
    %cst_11 = arith.constant dense<0.000000e+00> : vector<128xf32>
    %16 = vector.multi_reduction <add>, %15, %cst_11 [0] : vector<16x128xf32> to vector<128xf32>
    %17 = vector.shape_cast %16 : vector<128xf32> to vector<1x128xf32>
    %18 = arith.mulf %15, %15 : vector<16x128xf32>
    %cst_12 = arith.constant dense<0.000000e+00> : vector<128xf32>
    %19 = vector.multi_reduction <add>, %18, %cst_12 [0] : vector<16x128xf32> to vector<128xf32>
    %20 = vector.shape_cast %19 : vector<128xf32> to vector<1x128xf32>
    %c0_i32 = arith.constant 0 : i32
    %21 = arith.cmpi eq, %arg0, %c0_i32 : i32
    %22 = arith.extui %21 : i1 to i32
    %c0_i32_13 = arith.constant 0 : i32
    %23 = arith.cmpi ne, %22, %c0_i32_13 : i32
    scf.if %23 {
      %cst_22 = arith.constant 0.000000e+00 : f32
      %30 = vector.broadcast %cst_22 : f32 to vector<1x128xf32>
      %c0_23 = arith.constant 0 : index
      %c0_24 = arith.constant 0 : index
      %31 = vector.load %arg3[%c0_23, %c0_24] : memref<1x128xf32, #tpu.memory_space<vmem>>, vector<1x128xf32>
      tpu.vector_store %arg3[%c0_23, %c0_24], %30 {strides = array<i32>} : memref<1x128xf32, #tpu.memory_space<vmem>>, vector<1x128xf32>,
      %cst_25 = arith.constant 0.000000e+00 : f32
      %32 = vector.broadcast %cst_25 : f32 to vector<1x128xf32>
      %c0_26 = arith.constant 0 : index
      %c0_27 = arith.constant 0 : index
      %33 = vector.load %arg4[%c0_26, %c0_27] : memref<1x128xf32, #tpu.memory_space<vmem>>, vector<1x128xf32>
      tpu.vector_store %arg4[%c0_26, %c0_27], %32 {strides = array<i32>} : memref<1x128xf32, #tpu.memory_space<vmem>>, vector<1x128xf32>,
    } else {
    }
    %c0_14 = arith.constant 0 : index
    %c0_15 = arith.constant 0 : index
    %24 = vector.load %arg3[%c0_14, %c0_15] : memref<1x128xf32, #tpu.memory_space<vmem>>, vector<1x128xf32>
    %25 = arith.addf %24, %17 : vector<1x128xf32>
    %c0_16 = arith.constant 0 : index
    %c0_17 = arith.constant 0 : index
    %26 = vector.load %arg3[%c0_16, %c0_17] : memref<1x128xf32, #tpu.memory_space<vmem>>, vector<1x128xf32>
    tpu.vector_store %arg3[%c0_16, %c0_17], %25 {strides = array<i32>} : memref<1x128xf32, #tpu.memory_space<vmem>>, vector<1x128xf32>,
    %c0_18 = arith.constant 0 : index
    %c0_19 = arith.constant 0 : index
    %27 = vector.load %arg4[%c0_18, %c0_19] : memref<1x128xf32, #tpu.memory_space<vmem>>, vector<1x128xf32>
    %28 = arith.addf %27, %20 : vector<1x128xf32>
    %c0_20 = arith.constant 0 : index
    %c0_21 = arith.constant 0 : index
    %29 = vector.load %arg4[%c0_20, %c0_21] : memref<1x128xf32, #tpu.memory_space<vmem>>, vector<1x128xf32>
    tpu.vector_store %arg4[%c0_20, %c0_21], %28 {strides = array<i32>} : memref<1x128xf32, #tpu.memory_space<vmem>>, vector<1x128xf32>,
    return
  }
  func.func @transform_0(%arg0: i32) -> (i32, i32, i32) {
    %c0_i32 = arith.constant 0 : i32
    %c0_i32_0 = arith.constant 0 : i32
    %c0_i32_1 = arith.constant 0 : i32
    return %arg0, %c0_i32, %c0_i32_0 : i32, i32, i32
  }
  func.func @transform_1(%arg0: i32) -> (i32, i32, i32) {
    %c0_i32 = arith.constant 0 : i32
    %c0_i32_0 = arith.constant 0 : i32
    %c0_i32_1 = arith.constant 0 : i32
    %c0_i32_2 = arith.constant 0 : i32
    return %c0_i32, %c0_i32_0, %c0_i32_1 : i32, i32, i32
  }
  func.func @transform_2(%arg0: i32) -> (i32, i32) {
    %c0_i32 = arith.constant 0 : i32
    %c0_i32_0 = arith.constant 0 : i32
    %c0_i32_1 = arith.constant 0 : i32
    return %c0_i32, %c0_i32_0 : i32, i32
  }
  func.func @transform_3(%arg0: i32) -> (i32, i32) {
    %c0_i32 = arith.constant 0 : i32
    %c0_i32_0 = arith.constant 0 : i32
    %c0_i32_1 = arith.constant 0 : i32
    return %c0_i32, %c0_i32_0 : i32, i32
  }
}

</mosaic_0001>

<bundles_post_ra>
// kernel: tpu_custom_call.1
= control target key start
LH: loop header
LB: loop body
LE: loop exit
PB: predicated region body
PF: predicated region fallthrough
CT: control target
= control target key end

     0   :  { %9 = vsyncpa [#allocation3], 0  ;;  %s1026_s0 = inlined_call_operand.vmem [shape: f32[2,18,72], index: 0, kind: input, shape index: {}]   ;;  %s1027_s1 = inlined_call_operand.hbm [shape: f32[3,72,128], index: 1, kind: input, shape index: {}]   ;;  %s1028_s2 = inlined_call_operand.hbm [shape: f32[1,128], index: 2, kind: output, shape index: {0}]   ;;  %s1029_s3 = inlined_call_operand.hbm [shape: f32[1,128], index: 3, kind: output, shape index: {1}]  }
   0x1   :  { %10 = vsyncpa [#allocation4], 0 }
   0x2   :  { %11 = vsyncpa [#allocation7], 0  ;;  %s897_s12 = smov 0  }
   0x3 LB: > { %s903_s13 = sadd.s32 4294967295, %s869_s12   ;;  %p567_p0 = scmp.ge.s32.totalorder %s869_s12, 1  ;;  %s869_s12 = sphi %s897_s12, %s17_s12  }
   0x4   : > { %p111_p1 = scmp.lt.s32.totalorder %s869_s12, 3  ;;  %s871_s14 = smov [#allocation2]  }
   0x5   : > { %s123_s15 = sshll.u32 %s871_s14, 4  ;;  %p1030_p4 = scmp.eq.s32.totalorder %s903_s13, 0  ;;  %s124_s15 = int_to_ptr.vmem [resolvable:$true] %s123_s15 }
   0x6   : > { %p908_p3 = pnand %p567_p0, %p111_p1  ;;  %s771_s20 = scalar_lea.hbm %s1027_s1, 3456 }
   0x7   : > { %p772_p7 = scmp.ne.s32.totalorder %s1027_s1, %s771_s20  ;;  %p778_p11 = scmp.lt.u32.totalorder %s771_s20, %s1027_s1 }
   0x8   : > { %s1032_s16 = scalar_select %p908_p3, 1, 0 }
   0x9   : > { %p747_p5 = pneg %p908_p3 }
   0xb   : > { %p917_p6 = pnand %p1030_p4, %p747_p5 }
   0xd   : > { %p773_p8 = pneg %p917_p6 }
   0xf   : > { %p774_p9 = pnand %p773_p8, %p772_p7 }
  0x11   : > { %p775_p10 = pneg %p774_p9 }
  0x13   : > { %p780_p12 = pnand %p778_p11, %p775_p10 }
  0x15   : > { %783 = shalt.err (!%p780_p12)
}
  0x16   : > { %s784_s25 = scalar_lea.vmem %s124_s15, 3456  ;;  %p792_p5 = scmp.lt.s32.totalorder %s124_s15, %s124_s15 }
  0x17   : > { %p785_p13 = scmp.ne.s32.totalorder %s124_s15, %s784_s25  ;;  %p793_p2 = scmp.lt.s32.totalorder %s784_s25, %s784_s25 }
  0x19   : > { %p787_p0 = pnand %p785_p13, %p773_p8  ;;  %p794_p4 = por %p793_p2, %p792_p5 }
  0x1b   : > { %p788_p1 = pneg %p787_p0 }
  0x1d   : > { %p795_p3 = pnand %p794_p4, %p788_p1 }
  0x1f   : > { %798 = shalt.err (!%p795_p3)
}
  0x20   : > { %s872_s26 = smov 128   ;;  %s873_s27 = smov 8  }
  0x21   : > { %750 = dma.hbm_to_vmem [thread:$0]  (!%p917_p6), %s1027_s1, 3456, %s124_s15, [#allocation3], %s872_s26, %s872_s26, %s873_s27  }
  0x22   : > { %p1034_p7 = scmp.ne.s32.totalorder %s1032_s16, 0 }
  0x23   : > { %p1035_p9 = scmp.eq.s32.totalorder (!%p1034_p7), %s903_s13, 0 }
  0x24   : > { %147 = sbr.rel (%p1034_p7) target bundleno = 361 (0x169), region = 28 }
  0x2b   : > { %856 = dma.done.wait (%p1035_p9), [#allocation3], 3456   ;;  %p1036_p8 = pmov %p1035_p9 }
  0x2c   : > { %p166_p2 = scmp.lt.s32.totalorder %s903_s13, 1  ;;  %v174_v0 = vld [vmem:[#allocation2] sm:$0xff]  ;;  %v175_v1 = vld [vmem:[#allocation2 + $0x8] sm:$0xff]  ;;  %v176_v2 = vld [vmem:[#allocation2 + $0x10] sm:$0xff]  ;;  %vm202_vm0 = vcmask 588800   ;;  %vm196_vm1 = vcmask 1046528  }
  0x2d   : > { %858 = vsyncadd (%p1036_p8), [#allocation3], 4294963840  ;;  %v698_v3 = vpack.c.bf16 %v175_v1, %v174_v0  ;;  %v177_v4 = vld [vmem:[#allocation2 + $0x18] sm:$0xff]  ;;  %v178_v6 = vld [vmem:[#allocation2 + $0x20] sm:$0xff]  ;;  %vm371_vm2 = vcmask 1045504   ;;  %p1037_p3 = scmp.ne.s32.totalorder %s903_s13, 0 }
  0x2e   : > { %s167_s30 = scalar_select %p166_p2, %s903_s13, 1  ;;  %v702_v5 = vpack.c.bf16 %v177_v4, %v176_v2  ;;  %v179_v7 = vld [vmem:[#allocation2 + $0x28] sm:$0xff]  ;;  %v185_v9 = vld [vmem:[#allocation2 + $0x50] sm:$0xff]  ;;  %v186_v15 = vld [vmem:[#allocation2 + $0x58] sm:$0xff] }
  0x2f   : > { %699 = vmatprep.subr.bf16.mxu0 %v698_v3  ;;  %v184_v8 = vld [vmem:[#allocation2 + $0x48] sm:$0xff]  ;;  %v706_v13 = vpack.c.bf16 %v179_v7, %v178_v6  ;;  %v187_v16 = vld [vmem:[#allocation2 + $0x60] sm:$0xff]  ;;  %v180_v17 = vld [vmem:[#allocation2 + $0x30] sm:$0xff] }
  0x30   : > { %s734_s4 = smul.u32 24, %s167_s30  ;;  %701 = vmatpush3.bf16.msra.mxu0 %v698_v3  ;;  %v682_v11 = vpack.c.bf16 %v185_v9, %v184_v8  ;;  %v181_v18 = vld [vmem:[#allocation2 + $0x38] sm:$0xff]  ;;  %v686_v19 = vpack.c.bf16 %v187_v16, %v186_v15  ;;  %v188_v20 = vld [vmem:[#allocation2 + $0x68] sm:$0xff]  ;;  %v189_v22 = vld [vmem:[#allocation2 + $0x70] sm:$0xff] }
  0x31   : > { %703 = vmatprep.subr.bf16.mxu0 %v702_v5  ;;  %v690_v23 = vpack.c.bf16 %v189_v22, %v188_v20  ;;  %v710_v25 = vpack.c.bf16 %v181_v18, %v180_v17  ;;  %v190_v26 = vld [vmem:[#allocation2 + $0x78] sm:$0xff]  ;;  %v191_v27 = vld [vmem:[#allocation2 + $0x80] sm:$0xff]  ;;  %v362_v31 = vld [vmem:[#allocation2 + $0x90] sm:$0xff] }
  0x32   : > { %s948_s7 = scalar_lea.vmem %s1026_s0, %s734_s4  ;;  %683 = vmatprep.subr.bf16.mxu1 %v682_v11  ;;  %v694_v28 = vpack.c.bf16 %v191_v27, %v190_v26  ;;  %v182_v29 = vld [vmem:[#allocation2 + $0x40] sm:$0xff]  ;;  %v363_v32 = vld [vmem:[#allocation2 + $0x98] sm:$0xff]  ;;  %v365_v36 = vld [vmem:[#allocation2 + $0xa8] sm:$0xff] }
  0x33   : > { %v171_v10 = vld [vmem:[%s948_s7] sm:$0xff]  ;;  %v953_v14 = vld [vmem:[%s948_s7 + $0x8] sm:$0xff]  ;;  %685 = vmatpush3.bf16.msra.mxu1 %v682_v11  ;;  %v173_v30 = vld [vmem:[%s948_s7 + $0x10] sm:$0x3]  ;;  %v714_v38 = vpack.c.bf16 %v363_v32, %v362_v31 }
  0x34   : > { %v197_v12 = vrot.slane %v171_v10, 1  ;;  %658 = vmatprep.mubr.msk.f32.mxu0 %vm202_vm0, %v171_v10  ;;  %v198_v21 = vrot.slane %v953_v14, 1  ;;  %705 = vmatpush3.bf16.msra.mxu0 %v702_v5  ;;  %v372_v33 = vrot.slane %v171_v10, 2  ;;  %v373_v34 = vrot.slane %v953_v14, 2  ;;  %v364_v35 = vld [vmem:[#allocation2 + $0xa0] sm:$0xff]  ;;  %v192_v39 = vld [vmem:[#allocation2 + $0x88] sm:$0xff] }
  0x35   : > { %687 = vmatprep.subr.bf16.mxu1 %v686_v19  ;;  %707 = vmatprep.subr.bf16.mxu0 %v706_v13  ;;  %v200_v37 = vrot.slane %v173_v30, 1  ;;  %v718_v40 = vpack.c.bf16 %v365_v36, %v364_v35  ;;  %v366_v42 = vld [vmem:[#allocation2 + $0xb0] sm:$0xff]  ;;  %v367_v43 = vld [vmem:[#allocation2 + $0xb8] sm:$0xff]  ;;  %v368_v46 = vld [vmem:[#allocation2 + $0xc0] sm:$0xff]  ;;  %v375_v49 = vrot.slane %v173_v30, 2  ;;  %v874_v10 = vmov (!%p1037_p3), 0.0  }
  0x36   : > { %v199_v24 = vsel %vm196_vm1, %v197_v12, %v198_v21  ;;  %v374_v41 = vsel %vm371_vm2, %v372_v33, %v373_v34  ;;  %v722_v45 = vpack.c.bf16 %v367_v43, %v366_v42  ;;  %v369_v47 = vld [vmem:[#allocation2 + $0xc8] sm:$0xff]  ;;  %v370_v50 = vld [vmem:[#allocation2 + $0xd0] sm:$0xff]  ;;  %478 = vst [vmem:[#allocation5] sm:$0x1] (!%p1037_p3), %v874_v10  ;;  %479 = vst [vmem:[#allocation6] sm:$0x1] (!%p1037_p3), %v874_v10 }
  0x37   : > { %637 = vmatprep.mubr.msk.f32.mxu1 %vm202_vm0, %v199_v24  ;;  %689 = vmatpush3.bf16.msra.mxu1 %v686_v19  ;;  %v201_v44 = vsel %vm196_vm1, %v198_v21, %v200_v37  ;;  %v726_v48 = vpack.c.bf16 %v369_v47, %v368_v46  ;;  %v376_v51 = vsel %vm371_vm2, %v373_v34, %v375_v49 }
  0x38   : > { %709 = vmatpush3.bf16.msra.mxu0 %v706_v13  ;;  %691 = vmatprep.subr.bf16.mxu1 %v690_v23 }
  0x39   : > { %711 = vmatprep.subr.bf16.mxu0 %v710_v25 }
  0x3b   : > { %693 = vmatpush3.bf16.msra.mxu1 %v690_v23 }
  0x3c   : > { %713 = vmatpush3.bf16.msra.mxu0 %v710_v25  ;;  %695 = vmatprep.subr.bf16.mxu1 %v694_v28 }
  0x3d   : > { %656 = vmatprep.subr.mxu0 %v182_v29 }
  0x3f   : > { %697 = vmatpush3.bf16.msra.mxu1 %v694_v28 }
  0x40   : > { %657 = vmatpush3.msra.mxu0 %v182_v29  ;;  %635 = vmatprep.subr.mxu1 %v192_v39 }
  0x41   : > { %715 = vmatprep.subr.bf16.mxu0 %v714_v38  ;;  %659 = vmatmul.mubr.msk.f32.vlgmr.msra.gmra.mrb[0].mxu0 %vm202_vm0, %v953_v14 }
  0x42   : > { %717 = vmatpush3.bf16.msra.mxu0 %v714_v38  ;;  %679 = vmatprep.mubr.msk.f32.mxu0 %vm202_vm0, %v374_v41 }
  0x43   : > { %719 = vmatprep.subr.bf16.mxu0 %v718_v40  ;;  %636 = vmatpush3.msra.mxu1 %v192_v39 }
  0x44   : > { %638 = vmatmul.mubr.msk.f32.vlgmr.msra.gmra.mrb[0].mxu1 %vm202_vm0, %v201_v44 }
  0x46   : > { %721 = vmatpush3.bf16.msra.mxu0 %v718_v40 }
  0x47   : > { %723 = vmatprep.subr.bf16.mxu0 %v722_v45 }
  0x4a   : > { %725 = vmatpush3.bf16.msra.mxu0 %v722_v45 }
  0x4b   : > { %727 = vmatprep.subr.bf16.mxu0 %v726_v48 }
  0x4e   : > { %729 = vmatpush3.bf16.msra.mxu0 %v726_v48 }
  0x4f   : > { %677 = vmatprep.subr.mxu0 %v370_v50 }
  0x52   : > { %678 = vmatpush3.msra.mxu0 %v370_v50 }
  0x53   : > { %680 = vmatmul.mubr.msk.f32.vlgmr.msra.gmra.mrb[0].mxu0 %vm202_vm0, %v376_v51 }
 0x117   : > { %v639_v52 = vpop.f32.mrb[0].mxu1 }
 0x118   : > { %v273_v53 = vpop.f32.mrb[1].mxu1 }
 0x126   : > { %v681_v54 = vpop.f32.mrb[0].mxu0 }
 0x127   : > { %v730_v55 = vadd.f32 %v681_v54, %v639_v52  ;;  %v447_v56 = vpop.f32.mrb[1].mxu0 }
 0x128   : > { %v731_v57 = vadd.f32 %v447_v56, %v273_v53 }
 0x129   : > { %v466_v58 = vmul.f32 %v730_v55, %v730_v55 }
 0x12a   : > { %v458_v59 = vadd.f32 %v731_v57, %v730_v55  ;;  %v465_v60 = vmul.f32 %v731_v57, %v731_v57 }
 0x12c   : > { %v459_v61 = vrot.slane %v458_v59, 4  ;;  %v467_v62 = vadd.f32 %v466_v58, %v465_v60 }
 0x12e   : > { %v460_v63 = vadd.f32 %v459_v61, %v458_v59  ;;  %v468_v0 = vrot.slane %v467_v62, 4 }
 0x130   : > { %v461_v1 = vrot.slane %v460_v63, 2  ;;  %v469_v2 = vadd.f32 %v468_v0, %v467_v62 }
 0x132   : > { %v462_v3 = vadd.f32 %v461_v1, %v460_v63  ;;  %v470_v4 = vrot.slane %v469_v2, 2  ;;  %477 = sbr.rel (%p1037_p3) target bundleno = 313 (0x139), region = 36 }
 0x134   : > { %v463_v5 = vrot.slane %v462_v3, 1  ;;  %v471_v6 = vadd.f32 %v470_v4, %v469_v2 }
 0x136   : > { %v464_v7 = vadd.f32 %v463_v5, %v462_v3  ;;  %v472_v8 = vrot.slane %v471_v6, 1 }
 0x138   : > { %v473_v9 = vadd.f32 %v472_v8, %v471_v6 }
 0x139 PF: > { %v480_v11 = vld [vmem:[#allocation5] sm:$0x1]  ;;  %v483_v12 = vld [vmem:[#allocation6] sm:$0x1]  ;;  %p753_p4 = scmp.eq.s32.totalorder %s903_s13, 1  ;;  %s875_s8 = smov [#allocation5]  }
 0x13a   : > { %v481_v13 = vadd.f32 %v480_v11, %v464_v7  ;;  %v484_v14 = vadd.f32 %v483_v12, %v473_v9  ;;  %s493_s9 = sshll.u32 %s875_s8, 4  ;;  %s876_s10 = smov [#allocation6]   ;;  %s494_s9 = int_to_ptr.vmem [resolvable:$true] %s493_s9 }
 0x13b   : > { %s504_s11 = sshll.u32 %s876_s10, 4  ;;  %s799_s14 = scalar_lea.vmem %s494_s9, 16  ;;  %s971_s11 = int_to_ptr.vmem [resolvable:$true] %s504_s11 }
 0x13c   : > { %482 = vst [vmem:[#allocation5] sm:$0x1] %v481_v13  ;;  %485 = vst [vmem:[#allocation6] sm:$0x1] %v484_v14  ;;  %p800_p6 = scmp.ne.s32.totalorder %s494_s9, %s799_s14  ;;  %s805_s15 = scalar_lea.vmem %s494_s9, 32 }
 0x13d   : > { %p806_p12 = scmp.lt.s32.totalorder %s494_s9, %s494_s9  ;;  %p807_p13 = scmp.lt.s32.totalorder %s805_s15, %s799_s14 }
 0x13e   : > { %p801_p10 = pnand %p800_p6, %p753_p4 }
 0x13f   : > { %p808_p0 = por %p807_p13, %p806_p12 }
 0x140   : > { %p802_p11 = pneg %p801_p10 }
 0x142   : > { %p809_p1 = pnand %p808_p0, %p802_p11 }
 0x144   : > { %812 = shalt.err (!%p809_p1)
}
 0x145   : > { %s813_s18 = scalar_lea.hbm %s1028_s2, 16 }
 0x146   : > { %p814_p5 = scmp.ne.s32.totalorder %s1028_s2, %s813_s18  ;;  %p819_p8 = scmp.lt.u32.totalorder %s813_s18, %s1028_s2 }
 0x148   : > { %p815_p7 = pnand %p814_p5, %p753_p4 }
 0x14a   : > { %p816_p9 = pneg %p815_p7 }
 0x14c   : > { %p821_p2 = pnand %p819_p8, %p816_p9 }
 0x14e   : > { %824 = shalt.err (!%p821_p2)
}
 0x14f   : > { %740 = dma.vmem_to_hbm [thread:$0]  (%p753_p4), %s494_s9, 16, %s1028_s2, [#allocation4]  }
 0x150   : > { %s825_s25 = scalar_lea.vmem %s971_s11, 16  ;;  %s831_s26 = scalar_lea.vmem %s971_s11, 32 }
 0x151   : > { %p826_p3 = scmp.ne.s32.totalorder %s971_s11, %s825_s25  ;;  %p832_p11 = scmp.lt.s32.totalorder %s971_s11, %s971_s11 }
 0x152   : > { %p833_p12 = scmp.lt.s32.totalorder %s831_s26, %s825_s25 }
 0x153   : > { %p827_p6 = pnand %p826_p3, %p753_p4 }
 0x154   : > { %p834_p13 = por %p833_p12, %p832_p11 }
 0x155   : > { %p828_p10 = pneg %p827_p6 }
 0x157   : > { %p835_p0 = pnand %p834_p13, %p828_p10 }
 0x159   : > { %838 = shalt.err (!%p835_p0)
}
 0x15a   : > { %s839_s29 = scalar_lea.hbm %s1029_s3, 16 }
 0x15b   : > { %p840_p1 = scmp.ne.s32.totalorder %s1029_s3, %s839_s29  ;;  %p845_p9 = scmp.lt.u32.totalorder %s839_s29, %s1029_s3 }
 0x15d   : > { %p841_p5 = pnand %p840_p1, %p753_p4 }
 0x15f   : > { %p842_p7 = pneg %p841_p5 }
 0x161   : > { %p847_p8 = pnand %p845_p9, %p842_p7 }
 0x163   : > { %850 = shalt.err (!%p847_p8)
}
 0x164   : > { %742 = dma.vmem_to_hbm [thread:$0]  (%p753_p4), %s971_s11, 16, %s1029_s3, [#allocation7]  }
 0x165   : > { %860 = dma.done.wait (%p753_p4), [#allocation4], 16  }
 0x166   : > { %862 = vsyncadd (%p753_p4), [#allocation4], 4294967280 }
 0x167   : > { %864 = dma.done.wait (%p753_p4), [#allocation7], 16  }
 0x168   : > { %866 = vsyncadd (%p753_p4), [#allocation7], 4294967280 }
 0x169 PF: > { %s17_s12 = sadd.s32 1, %s869_s12  }
 0x16a   : > { %p14_p2 = scmp.ge.s32.totalorder %s17_s12, 4  }
 0x16c   :  { %16 = sbr.rel (!%p14_p2) target bundleno = 3 (0x3), region = 74 }
 0x173   :  { %521 = vsyncpa [#allocation3], 1 }
 0x174   :  { %523 = vsyncpa [#allocation3 + $0x1], 1 }
 0x175   :  { %524 = vsyncpa [#allocation4], 1 }
 0x176   :  { %526 = vsyncpa [#allocation4 + $0x1], 1 }
 0x177   :  { %527 = vsyncpa [#allocation7], 1 }

</bundles_post_ra>
